<compile_context>
chip_gen: v7x
topology: tpu7x:2x2x1
jax: 0.10.0
libtpu: 0.0.40
codegen_flags: <defaults>
</compile_context>

<pallas_src>
import jax
import jax.numpy as jnp
from jax.experimental import pallas as pl
from jax.experimental.pallas import tpu as pltpu


def _mlp_kernel(x_ref, w1_ref, b1_ref, w2_ref, b2_ref, w3_ref, b3_ref, o_ref):
    # x_ref: (TM, K_pad) bf16; weights bf16; biases f32; output f32.
    x = x_ref[...]
    h1 = jnp.dot(x, w1_ref[...], preferred_element_type=jnp.float32) + b1_ref[...]
    h1 = jnp.maximum(h1, 0.0).astype(jnp.bfloat16)
    h2 = jnp.dot(h1, w2_ref[...], preferred_element_type=jnp.float32) + b2_ref[...]
    h2 = jnp.maximum(h2, 0.0).astype(jnp.bfloat16)
    out = jnp.dot(h2, w3_ref[...], preferred_element_type=jnp.float32) + b3_ref[...]
    o_ref[...] = out.astype(o_ref.dtype)


def _round_up(a, m):
    return ((a + m - 1) // m) * m


def v1_classifier_forward(in_x, params, *, tm_max=1024):
    """in_x: (N, C, H, W) float32. Returns logits (N, n_classes) float32."""
    w1, b1, w2, b2, w3, b3 = params
    n = in_x.shape[0]
    n_feats = w1.shape[0]
    h1_dim = w1.shape[1]
    h2_dim = w2.shape[1]
    n_classes = w3.shape[1]

    # Lane-dense padded dims.
    k_pad = _round_up(max(n_feats, 128), 128)          # fc1 contraction dim
    n_out_pad = _round_up(max(n_classes, 128), 128)    # logits dim

    # Glue: flatten NCHW -> (N, n_feats), identical to torch.flatten(x, 1).
    x = in_x.reshape(n, -1).astype(jnp.float32)
    assert x.shape[1] == n_feats

    # Batch tile: multiple of 8 (sublane-safe), capped so the resident weights
    # plus double-buffered x/out tiles fit easily in v7x's 64 MiB VMEM.
    tm = min(tm_max, _round_up(n, 8))
    n_pad = _round_up(n, tm)

    # bf16 activations/weights (halves DMA bytes, native MXU); biases stay f32.
    x_bf = jnp.pad(x, ((0, n_pad - n), (0, k_pad - n_feats))).astype(jnp.bfloat16)
    w1b = jnp.pad(w1, ((0, k_pad - n_feats), (0, 0))).astype(jnp.bfloat16)
    w2b = w2.astype(jnp.bfloat16)
    w3p = jnp.pad(w3, ((0, 0), (0, n_out_pad - n_classes))).astype(jnp.bfloat16)
    b3p = jnp.pad(b3, ((0, 0), (0, n_out_pad - n_classes)))

    grid = (n_pad // tm,)

    # Weight/bias operands: full block, constant index_map -> VMEM-resident.
    def const(shape):
        return pl.BlockSpec(shape, lambda i, _ndim=len(shape): (0,) * _ndim)

    flops = 2 * n_pad * (k_pad * h1_dim + h1_dim * h2_dim + h2_dim * n_out_pad)
    bytes_accessed = (
        x_bf.size * 2
        + (w1b.size + w2b.size + w3p.size) * 2
        + (b1.size + b2.size + b3p.size) * 4
        + n_pad * n_out_pad * 4
    )

    out = pl.pallas_call(
        _mlp_kernel,
        out_shape=jax.ShapeDtypeStruct((n_pad, n_out_pad), jnp.float32),
        grid=grid,
        in_specs=[
            pl.BlockSpec((tm, k_pad), lambda i: (i, 0)),
            const(w1b.shape), const(b1.shape),
            const(w2b.shape), const(b2.shape),
            const(w3p.shape), const(b3p.shape),
        ],
        out_specs=pl.BlockSpec((tm, n_out_pad), lambda i: (i, 0)),
        compiler_params=pltpu.CompilerParams(
            dimension_semantics=("parallel",),
        ),
        cost_estimate=pl.CostEstimate(
            flops=flops, transcendentals=0, bytes_accessed=bytes_accessed),
    )(x_bf, w1b, b1, w2b, b2, w3p, b3p)

    return out[:n, :n_classes]


def init_params(key, n_feats, n_classes):
    """Deterministic synthetic parameters (nn.Linear shapes, stored as (in, out))."""
    ks = jax.random.split(key, 6)

    def linear(kw, kb, fan_in, fan_out):
        bound = 1.0 / jnp.sqrt(fan_in)
        w = jax.random.uniform(kw, (fan_in, fan_out), jnp.float32, -bound, bound)
        b = jax.random.uniform(kb, (1, fan_out), jnp.float32, -bound, bound)
        return w, b

    w1, b1 = linear(ks[0], ks[1], n_feats, 128)
    w2, b2 = linear(ks[2], ks[3], 128, 512)
    w3, b3 = linear(ks[4], ks[5], 512, n_classes)
    return (w1, b1, w2, b2, w3, b3)


if __name__ == "__main__":
    N, C, H, W = 2, 4, 16, 16
    n_feats = C * H * W  # 1024
    n_classes = 10

    key = jax.random.PRNGKey(0)
    k_x, k_p = jax.random.split(key)
    x = jax.random.normal(k_x, (N, C, H, W), dtype=jnp.float32)
    params = init_params(k_p, n_feats, n_classes)

    logits = v1_classifier_forward(x, params)
    jax.block_until_ready(logits)
    assert logits.shape == (N, n_classes)

    # Reference in plain JAX using the same bf16-weight / f32-accumulate math.
    w1, b1, w2, b2, w3, b3 = params
    xf = x.reshape(N, -1)
    h1 = jnp.dot(xf.astype(jnp.bfloat16), w1.astype(jnp.bfloat16),
                 preferred_element_type=jnp.float32) + b1
    h1 = jnp.maximum(h1, 0.0).astype(jnp.bfloat16)
    h2 = jnp.dot(h1, w2.astype(jnp.bfloat16),
                 preferred_element_type=jnp.float32) + b2
    h2 = jnp.maximum(h2, 0.0).astype(jnp.bfloat16)
    ref = jnp.dot(h2, w3.astype(jnp.bfloat16),
                  preferred_element_type=jnp.float32) + b3
    assert jnp.allclose(logits, ref, atol=1e-2, rtol=1e-2)

    # Also loosely track the pure-f32 PyTorch-equivalent reference.
    f1 = jnp.maximum(xf @ w1 + b1, 0.0)
    f2 = jnp.maximum(f1 @ w2 + b2, 0.0)
    f32_ref = f2 @ w3 + b3
    assert jnp.allclose(logits, f32_ref, atol=5e-2, rtol=5e-2)

    print("KERNEL_OK")
</pallas_src>

<mosaic_0001>
module attributes {stable_mosaic.version = 11 : i64} {
  func.func @_mlp_kernel(%arg0: i32, %arg1: memref<8x1024xbf16, #tpu.memory_space<vmem>>, %arg2: memref<1024x128xbf16, #tpu.memory_space<vmem>>, %arg3: memref<1x128xf32, #tpu.memory_space<vmem>>, %arg4: memref<128x512xbf16, #tpu.memory_space<vmem>>, %arg5: memref<1x512xf32, #tpu.memory_space<vmem>>, %arg6: memref<512x128xbf16, #tpu.memory_space<vmem>>, %arg7: memref<1x128xf32, #tpu.memory_space<vmem>>, %arg8: memref<8x128xf32, #tpu.memory_space<vmem>>) attributes {dimension_semantics = [#tpu.dimension_semantics<parallel>], iteration_bounds = array<i64: 1>, scalar_prefetch = 0 : i64, scratch_operands = 0 : i64, tpu.core_type = #tpu.core_type<tc>, window_params = [{transform_indices = @transform_0, window_bounds = array<i64: 8, 1024>}, {pipeline_mode = #tpu.pipeline_mode<synchronous>, transform_indices = @transform_1, window_bounds = array<i64: 1024, 128>}, {pipeline_mode = #tpu.pipeline_mode<synchronous>, transform_indices = @transform_2, window_bounds = array<i64: 1, 128>}, {pipeline_mode = #tpu.pipeline_mode<synchronous>, transform_indices = @transform_3, window_bounds = array<i64: 128, 512>}, {pipeline_mode = #tpu.pipeline_mode<synchronous>, transform_indices = @transform_4, window_bounds = array<i64: 1, 512>}, {pipeline_mode = #tpu.pipeline_mode<synchronous>, transform_indices = @transform_5, window_bounds = array<i64: 512, 128>}, {pipeline_mode = #tpu.pipeline_mode<synchronous>, transform_indices = @transform_6, window_bounds = array<i64: 1, 128>}, {transform_indices = @transform_7, window_bounds = array<i64: 8, 128>}]} {
    %c0 = arith.constant 0 : index
    %c0_0 = arith.constant 0 : index
    %0 = vector.load %arg1[%c0, %c0_0] : memref<8x1024xbf16, #tpu.memory_space<vmem>>, vector<8x1024xbf16>
    %c0_1 = arith.constant 0 : index
    %c0_2 = arith.constant 0 : index
    %1 = vector.load %arg2[%c0_1, %c0_2] : memref<1024x128xbf16, #tpu.memory_space<vmem>>, vector<1024x128xbf16>
    %cst = arith.constant dense<0.000000e+00> : vector<8x128xf32>
    %2 = tpu.matmul %0, %1, %cst {dimension_numbers = #tpu.dot_dimension_numbers<[1], [0], [0], [1], [0, 0, 1, 1], [], []>} : vector<8x1024xbf16>, vector<1024x128xbf16>, vector<8x128xf32> -> vector<8x128xf32>
    %c0_3 = arith.constant 0 : index
    %c0_4 = arith.constant 0 : index
    %3 = vector.load %arg3[%c0_3, %c0_4] : memref<1x128xf32, #tpu.memory_space<vmem>>, vector<1x128xf32>
    %4 = vector.broadcast %3 : vector<1x128xf32> to vector<8x128xf32>
    %5 = arith.addf %2, %4 : vector<8x128xf32>
    %cst_5 = arith.constant 0.000000e+00 : f32
    %6 = vector.broadcast %cst_5 : f32 to vector<8x128xf32>
    %7 = arith.maximumf %5, %6 : vector<8x128xf32>
    %8 = arith.truncf %7 : vector<8x128xf32> to vector<8x128xbf16>
    %c0_6 = arith.constant 0 : index
    %c0_7 = arith.constant 0 : index
    %9 = vector.load %arg4[%c0_6, %c0_7] : memref<128x512xbf16, #tpu.memory_space<vmem>>, vector<128x512xbf16>
    %cst_8 = arith.constant dense<0.000000e+00> : vector<8x512xf32>
    %10 = tpu.matmul %8, %9, %cst_8 {dimension_numbers = #tpu.dot_dimension_numbers<[1], [0], [0], [1], [0, 0, 1, 1], [], []>} : vector<8x128xbf16>, vector<128x512xbf16>, vector<8x512xf32> -> vector<8x512xf32>
    %c0_9 = arith.constant 0 : index
    %c0_10 = arith.constant 0 : index
    %11 = vector.load %arg5[%c0_9, %c0_10] : memref<1x512xf32, #tpu.memory_space<vmem>>, vector<1x512xf32>
    %12 = vector.broadcast %11 : vector<1x512xf32> to vector<8x512xf32>
    %13 = arith.addf %10, %12 : vector<8x512xf32>
    %cst_11 = arith.constant 0.000000e+00 : f32
    %14 = vector.broadcast %cst_11 : f32 to vector<8x512xf32>
    %15 = arith.maximumf %13, %14 : vector<8x512xf32>
    %16 = arith.truncf %15 : vector<8x512xf32> to vector<8x512xbf16>
    %c0_12 = arith.constant 0 : index
    %c0_13 = arith.constant 0 : index
    %17 = vector.load %arg6[%c0_12, %c0_13] : memref<512x128xbf16, #tpu.memory_space<vmem>>, vector<512x128xbf16>
    %cst_14 = arith.constant dense<0.000000e+00> : vector<8x128xf32>
    %18 = tpu.matmul %16, %17, %cst_14 {dimension_numbers = #tpu.dot_dimension_numbers<[1], [0], [0], [1], [0, 0, 1, 1], [], []>} : vector<8x512xbf16>, vector<512x128xbf16>, vector<8x128xf32> -> vector<8x128xf32>
    %c0_15 = arith.constant 0 : index
    %c0_16 = arith.constant 0 : index
    %19 = vector.load %arg7[%c0_15, %c0_16] : memref<1x128xf32, #tpu.memory_space<vmem>>, vector<1x128xf32>
    %20 = vector.broadcast %19 : vector<1x128xf32> to vector<8x128xf32>
    %21 = arith.addf %18, %20 : vector<8x128xf32>
    %c0_17 = arith.constant 0 : index
    %c0_18 = arith.constant 0 : index
    %22 = vector.load %arg8[%c0_17, %c0_18] : memref<8x128xf32, #tpu.memory_space<vmem>>, vector<8x128xf32>
    tpu.vector_store %arg8[%c0_17, %c0_18], %21 {strides = array<i32>} : memref<8x128xf32, #tpu.memory_space<vmem>>, vector<8x128xf32>,
    return
  }
  func.func @transform_0(%arg0: i32) -> (i32, i32) {
    %c0_i32 = arith.constant 0 : i32
    %c0_i32_0 = arith.constant 0 : i32
    return %arg0, %c0_i32 : i32, i32
  }
  func.func @transform_1(%arg0: i32) -> (i32, i32) {
    %c0_i32 = arith.constant 0 : i32
    %c0_i32_0 = arith.constant 0 : i32
    %c0_i32_1 = arith.constant 0 : i32
    return %c0_i32, %c0_i32_0 : i32, i32
  }
  func.func @transform_2(%arg0: i32) -> (i32, i32) {
    %c0_i32 = arith.constant 0 : i32
    %c0_i32_0 = arith.constant 0 : i32
    %c0_i32_1 = arith.constant 0 : i32
    return %c0_i32, %c0_i32_0 : i32, i32
  }
  func.func @transform_3(%arg0: i32) -> (i32, i32) {
    %c0_i32 = arith.constant 0 : i32
    %c0_i32_0 = arith.constant 0 : i32
    %c0_i32_1 = arith.constant 0 : i32
    return %c0_i32, %c0_i32_0 : i32, i32
  }
  func.func @transform_4(%arg0: i32) -> (i32, i32) {
    %c0_i32 = arith.constant 0 : i32
    %c0_i32_0 = arith.constant 0 : i32
    %c0_i32_1 = arith.constant 0 : i32
    return %c0_i32, %c0_i32_0 : i32, i32
  }
  func.func @transform_5(%arg0: i32) -> (i32, i32) {
    %c0_i32 = arith.constant 0 : i32
    %c0_i32_0 = arith.constant 0 : i32
    %c0_i32_1 = arith.constant 0 : i32
    return %c0_i32, %c0_i32_0 : i32, i32
  }
  func.func @transform_6(%arg0: i32) -> (i32, i32) {
    %c0_i32 = arith.constant 0 : i32
    %c0_i32_0 = arith.constant 0 : i32
    %c0_i32_1 = arith.constant 0 : i32
    return %c0_i32, %c0_i32_0 : i32, i32
  }
  func.func @transform_7(%arg0: i32) -> (i32, i32) {
    %c0_i32 = arith.constant 0 : i32
    %c0_i32_0 = arith.constant 0 : i32
    return %arg0, %c0_i32 : i32, i32
  }
}

</mosaic_0001>

<bundles_post_ra>
// kernel: tpu_custom_call.1
= control target key start
LH: loop header
LB: loop body
LE: loop exit
PB: predicated region body
PF: predicated region fallthrough
CT: control target
= control target key end

     0   :  { %12 = vsyncpa [#allocation3], 0  ;;  %s2134_s0 = inlined_call_operand.hbm [shape: bf16[8,1024], index: 0, kind: input, shape index: {}]   ;;  %s2135_s1 = inlined_call_operand.hbm [shape: bf16[1024,128], index: 1, kind: input, shape index: {}]   ;;  %s2136_s2 = inlined_call_operand.vmem [shape: f32[1,128], index: 2, kind: input, shape index: {}]   ;;  %s2137_s3 = inlined_call_operand.hbm [shape: bf16[128,512], index: 3, kind: input, shape index: {}]   ;;  %s2138_s4 = inlined_call_operand.vmem [shape: f32[1,512], index: 4, kind: input, shape index: {}]   ;;  %s2139_s5 = inlined_call_operand.hbm [shape: bf16[512,128], index: 5, kind: input, shape index: {}]   ;;  %s2140_s6 = inlined_call_operand.vmem [shape: f32[1,128], index: 6, kind: input, shape index: {}]   ;;  %s2141_s7 = inlined_call_operand.hbm [shape: f32[8,128], index: 7, kind: output, shape index: {}]  }
   0x1   :  { %13 = vsyncpa [#allocation6], 0 }
   0x2   :  { %14 = vsyncpa [#allocation9], 0 }
   0x3   :  { %15 = vsyncpa [#allocation4], 0  ;;  %s2009_s24 = smov [#allocation5]   ;;  %s1891_s28 = scalar_lea.hbm %s2135_s1, 8192 }
   0x4   :  { %s31_s25 = sshll.u32 %s2009_s24, 4  ;;  %p1892_p0 = scmp.ne.s32.totalorder %s2135_s1, %s1891_s28  ;;  %s32_s25 = int_to_ptr.vmem [resolvable:$true] %s31_s25 }
   0x5   :  { %p1895_p1 = scmp.lt.u32.totalorder %s1891_s28, %s2135_s1 }
   0x7   :  { %p1897_p2 = pnand %p1895_p1, %p1892_p0 }
   0x9   :  { %1900 = shalt.err (!%p1897_p2)
}
   0xa   :  { %s1901_s10 = scalar_lea.vmem %s32_s25, 8192  ;;  %p1906_p4 = scmp.lt.s32.totalorder %s32_s25, %s32_s25 }
   0xb   :  { %p1902_p3 = scmp.ne.s32.totalorder %s32_s25, %s1901_s10  ;;  %p1907_p5 = scmp.lt.s32.totalorder %s1901_s10, %s1901_s10 }
   0xd   :  { %p1908_p6 = por %p1907_p5, %p1906_p4 }
   0xf   :  { %p1909_p7 = pnand %p1908_p6, %p1902_p3 }
  0x11   :  { %1912 = shalt.err (!%p1909_p7)
}
  0x12   :  { %s2010_s11 = smov 64   ;;  %s2011_s12 = smov 4  }
  0x13   :  { %37 = dma.hbm_to_vmem [thread:$0]  %s2135_s1, 8192, %s32_s25, [#allocation6], %s2010_s11, %s2010_s11, %s2011_s12  }
  0x14   :  { %s2012_s15 = smov [#allocation2]   ;;  %s2013_s17 = smov [#allocation7]  }
  0x15   :  { %s22_s16 = sshll.u32 %s2012_s15, 4  ;;  %s45_s18 = sshll.u32 %s2013_s17, 4  ;;  %s23_s16 = int_to_ptr.vmem [resolvable:$true] %s22_s16  ;;  %s46_s18 = int_to_ptr.vmem [resolvable:$true] %s45_s18 }
  0x16   :  { %s1913_s21 = scalar_lea.hbm %s2134_s0, 512 }
  0x17   :  { %p1914_p8 = scmp.ne.s32.totalorder %s2134_s0, %s1913_s21  ;;  %p1917_p9 = scmp.lt.u32.totalorder %s1913_s21, %s2134_s0 }
  0x19   :  { %p1919_p10 = pnand %p1917_p9, %p1914_p8 }
  0x1b   :  { %1922 = shalt.err (!%p1919_p10)
}
  0x1c   :  { %s1923_s1 = scalar_lea.vmem %s23_s16, 512  ;;  %p1928_p12 = scmp.lt.s32.totalorder %s23_s16, %s23_s16 }
  0x1d   :  { %p1924_p11 = scmp.ne.s32.totalorder %s23_s16, %s1923_s1  ;;  %p1929_p13 = scmp.lt.s32.totalorder %s1923_s1, %s1923_s1 }
  0x1f   :  { %p1930_p0 = por %p1929_p13, %p1928_p12 }
  0x21   :  { %p1931_p1 = pnand %p1930_p0, %p1924_p11 }
  0x23   :  { %1934 = shalt.err (!%p1931_p1)
}
  0x24   :  { %25 = dma.hbm_to_vmem [thread:$0]  %s2134_s0, 512, %s23_s16, [#allocation3]  }
  0x25   :  { %s1935_s30 = scalar_lea.hbm %s2137_s3, 4096 }
  0x26   :  { %p1936_p2 = scmp.ne.s32.totalorder %s2137_s3, %s1935_s30  ;;  %p1939_p3 = scmp.lt.u32.totalorder %s1935_s30, %s2137_s3 }
  0x28   :  { %p1941_p4 = pnand %p1939_p3, %p1936_p2 }
  0x2a   :  { %1944 = shalt.err (!%p1941_p4)
}
  0x2b   :  { %s1945_s14 = scalar_lea.vmem %s46_s18, 4096  ;;  %p1950_p6 = scmp.lt.s32.totalorder %s46_s18, %s46_s18 }
  0x2c   :  { %p1946_p5 = scmp.ne.s32.totalorder %s46_s18, %s1945_s14  ;;  %p1951_p7 = scmp.lt.s32.totalorder %s1945_s14, %s1945_s14 }
  0x2e   :  { %p1952_p8 = por %p1951_p7, %p1950_p6 }
  0x30   :  { %p1953_p9 = pnand %p1952_p8, %p1946_p5 }
  0x32   :  { %1956 = shalt.err (!%p1953_p9)
}
  0x33   :  { %s2014_s0 = smov 256   ;;  %s2015_s15 = smov 16  }
  0x34   :  { %51 = dma.hbm_to_vmem [thread:$0]  %s2137_s3, 4096, %s46_s18, [#allocation6], %s2014_s0, %s2014_s0, %s2015_s15  }
  0x35   :  { %s2016_s19 = smov [#allocation8]   ;;  %s1957_s23 = scalar_lea.hbm %s2139_s5, 4096 }
  0x36   :  { %s59_s20 = sshll.u32 %s2016_s19, 4  ;;  %p1958_p10 = scmp.ne.s32.totalorder %s2139_s5, %s1957_s23  ;;  %s60_s20 = int_to_ptr.vmem [resolvable:$true] %s59_s20 }
  0x37   :  { %p1961_p11 = scmp.lt.u32.totalorder %s1957_s23, %s2139_s5 }
  0x39   :  { %p1963_p12 = pnand %p1961_p11, %p1958_p10 }
  0x3b   :  { %1966 = shalt.err (!%p1963_p12)
}
  0x3c   :  { %s1967_s27 = scalar_lea.vmem %s60_s20, 4096  ;;  %p1972_p0 = scmp.lt.s32.totalorder %s60_s20, %s60_s20 }
  0x3d   :  { %p1968_p13 = scmp.ne.s32.totalorder %s60_s20, %s1967_s27  ;;  %p1973_p1 = scmp.lt.s32.totalorder %s1967_s27, %s1967_s27 }
  0x3f   :  { %p1974_p2 = por %p1973_p1, %p1972_p0 }
  0x41   :  { %p1975_p3 = pnand %p1974_p2, %p1968_p13 }
  0x43   :  { %1978 = shalt.err (!%p1975_p3)
}
  0x44   :  { %65 = dma.hbm_to_vmem [thread:$0]  %s2139_s5, 4096, %s60_s20, [#allocation9], %s2010_s11, %s2010_s11, %s2011_s12  }
  0x45   :  { %2001 = dma.done.wait [#allocation3], 512  }
  0x46   :  { %2002 = vsyncadd [#allocation3], 4294966784 }
  0x47   :  { %2003 = dma.done.wait [#allocation6], 12288  }
  0x48   :  { %2004 = vsyncadd [#allocation6], 4294955008 }
  0x49   :  { %2005 = dma.done.wait [#allocation9], 4096  }
  0x4a   :  { %2006 = vsyncadd [#allocation9], 4294963200  ;;  %v1739_v0 = vld [vmem:[#allocation5 + $0x40] sm:$0xff]   ;;  %v1743_v4 = vld [vmem:[#allocation5 + $0x48] sm:$0xff]   ;;  %s2018_s29 = smov [#allocation10]  }
  0x4b   :  { %v1740_v1 = vld [vmem:[#allocation5 + $0xc0] sm:$0xff]   ;;  %1597 = vmatprep.subr.bf16.mxu0 %v1739_v0  ;;  %v1744_v5 = vld [vmem:[#allocation5 + $0xc8] sm:$0xff]   ;;  %v1747_v8 = vld [vmem:[#allocation5 + $0x50] sm:$0xff]   ;;  %s1448_s30 = sshll.u32 %s2018_s29, 4  ;;  %s1449_s30 = int_to_ptr.vmem [resolvable:$true] %s1448_s30 }
  0x4c   :  { %v1741_v2 = vld [vmem:[#allocation5] sm:$0xff]   ;;  %1619 = vmatprep.subr.bf16.mxu1 %v1740_v1  ;;  %v1745_v6 = vld [vmem:[#allocation5 + $0x8] sm:$0xff]   ;;  %v1748_v9 = vld [vmem:[#allocation5 + $0xd0] sm:$0xff]   ;;  %s1979_s8 = scalar_lea.vmem %s1449_s30, 128  ;;  %p1984_p5 = scmp.lt.s32.totalorder %s1449_s30, %s1449_s30 }
  0x4d   :  { %v1742_v3 = vld [vmem:[#allocation5 + $0x80] sm:$0xff]   ;;  %1598 = vmatpush3.bf16.msra.mxu0 %v1741_v2  ;;  %v1746_v7 = vld [vmem:[#allocation5 + $0x88] sm:$0xff]   ;;  %v1749_v10 = vld [vmem:[#allocation5 + $0x10] sm:$0xff]   ;;  %p1980_p4 = scmp.ne.s32.totalorder %s1449_s30, %s1979_s8  ;;  %p1985_p6 = scmp.lt.s32.totalorder %s1979_s8, %s1979_s8 }
  0x4e   :  { %1620 = vmatpush3.bf16.msra.mxu1 %v1742_v3  ;;  %1599 = vmatprep.subr.bf16.mxu0 %v1743_v4  ;;  %v1750_v11 = vld [vmem:[#allocation5 + $0x90] sm:$0xff]   ;;  %v1751_v12 = vld [vmem:[#allocation5 + $0x58] sm:$0xff]   ;;  %v1755_v16 = vld [vmem:[#allocation5 + $0x60] sm:$0xff]  }
  0x4f   :  { %1621 = vmatprep.subr.bf16.mxu1 %v1744_v5  ;;  %v1752_v13 = vld [vmem:[#allocation5 + $0xd8] sm:$0xff]   ;;  %v1756_v17 = vld [vmem:[#allocation5 + $0xe0] sm:$0xff]   ;;  %v1759_v20 = vld [vmem:[#allocation5 + $0x68] sm:$0xff]   ;;  %p1986_p7 = por %p1985_p6, %p1984_p5 }
  0x50   :  { %v1753_v14 = vld [vmem:[#allocation5 + $0x18] sm:$0xff]   ;;  %v1757_v18 = vld [vmem:[#allocation5 + $0x20] sm:$0xff]   ;;  %v1760_v21 = vld [vmem:[#allocation5 + $0xe8] sm:$0xff]  }
  0x51   :  { %1600 = vmatpush3.bf16.msra.mxu0 %v1745_v6  ;;  %v1754_v15 = vld [vmem:[#allocation5 + $0x98] sm:$0xff]   ;;  %v1758_v19 = vld [vmem:[#allocation5 + $0xa0] sm:$0xff]   ;;  %v1761_v22 = vld [vmem:[#allocation5 + $0x28] sm:$0xff]   ;;  %p1987_p8 = pnand %p1986_p7, %p1980_p4 }
  0x52   :  { %1622 = vmatpush3.bf16.msra.mxu1 %v1746_v7  ;;  %1601 = vmatprep.subr.bf16.mxu0 %v1747_v8  ;;  %v1762_v23 = vld [vmem:[#allocation5 + $0xa8] sm:$0xff]   ;;  %v1763_v24 = vld [vmem:[#allocation5 + $0x70] sm:$0xff]   ;;  %v1767_v28 = vld [vmem:[#allocation5 + $0x78] sm:$0xff]  }
  0x53   :  { %1623 = vmatprep.subr.bf16.mxu1 %v1748_v9  ;;  %v1764_v25 = vld [vmem:[#allocation5 + $0xf0] sm:$0xff]   ;;  %v1768_v29 = vld [vmem:[#allocation5 + $0xf8] sm:$0xff]   ;;  %v81_v32 = vld [vmem:[#allocation2] sm:$0xff] }
  0x54   :  { %v1765_v26 = vld [vmem:[#allocation5 + $0x30] sm:$0xff]   ;;  %v1769_v30 = vld [vmem:[#allocation5 + $0x38] sm:$0xff]   ;;  %v82_v33 = vld [vmem:[#allocation2 + $0x8] sm:$0xff]  ;;  %v1460_v34 = vcombine.low %v81_v32, %v81_v32  ;;  %v1461_v35 = vcombine.high %v81_v32, %v81_v32 }
  0x55   :  { %1602 = vmatpush3.bf16.msra.mxu0 %v1749_v10  ;;  %v1766_v27 = vld [vmem:[#allocation5 + $0xb0] sm:$0xff]   ;;  %v1770_v31 = vld [vmem:[#allocation5 + $0xb8] sm:$0xff]   ;;  %v1462_v36 = vcombine.low %v82_v33, %v82_v33  ;;  %v1463_v37 = vcombine.high %v82_v33, %v82_v33  ;;  %v1775_v38 = vld [vmem:[#allocation5 + $0x140] sm:$0xff]  }
  0x56   :  { %1624 = vmatpush3.bf16.msra.mxu1 %v1750_v11  ;;  %1603 = vmatprep.subr.bf16.mxu0 %v1751_v12  ;;  %v1776_v39 = vld [vmem:[#allocation5 + $0x1c0] sm:$0xff]   ;;  %v1779_v42 = vld [vmem:[#allocation5 + $0x148] sm:$0xff]   ;;  %v1783_v46 = vld [vmem:[#allocation5 + $0x150] sm:$0xff]  }
  0x57   :  { %1625 = vmatprep.subr.bf16.mxu1 %v1752_v13  ;;  %664 = vmatprep.mubr.bf16.mxu0 %v1461_v35  ;;  %v1777_v40 = vld [vmem:[#allocation5 + $0x100] sm:$0xff]   ;;  %v1780_v43 = vld [vmem:[#allocation5 + $0x1c8] sm:$0xff]   ;;  %v1784_v47 = vld [vmem:[#allocation5 + $0x1d0] sm:$0xff]  }
  0x58   :  { %704 = vmatprep.mubr.bf16.mxu1 %v1463_v37  ;;  %v1778_v41 = vld [vmem:[#allocation5 + $0x180] sm:$0xff]   ;;  %v1781_v44 = vld [vmem:[#allocation5 + $0x108] sm:$0xff]   ;;  %v1785_v48 = vld [vmem:[#allocation5 + $0x110] sm:$0xff]  }
  0x59   :  { %1604 = vmatpush3.bf16.msra.mxu0 %v1753_v14  ;;  %v1782_v45 = vld [vmem:[#allocation5 + $0x188] sm:$0xff]   ;;  %v1786_v49 = vld [vmem:[#allocation5 + $0x190] sm:$0xff]   ;;  %v1787_v50 = vld [vmem:[#allocation5 + $0x158] sm:$0xff]  }
  0x5a   :  { %1626 = vmatpush3.bf16.msra.mxu1 %v1754_v15  ;;  %1605 = vmatprep.subr.bf16.mxu0 %v1755_v16  ;;  %v1788_v51 = vld [vmem:[#allocation5 + $0x1d8] sm:$0xff]   ;;  %v1791_v54 = vld [vmem:[#allocation5 + $0x160] sm:$0xff]   ;;  %v1795_v58 = vld [vmem:[#allocation5 + $0x168] sm:$0xff]  }
  0x5b   :  { %1627 = vmatprep.subr.bf16.mxu1 %v1756_v17  ;;  %v1789_v52 = vld [vmem:[#allocation5 + $0x118] sm:$0xff]   ;;  %v1792_v55 = vld [vmem:[#allocation5 + $0x1e0] sm:$0xff]   ;;  %v1796_v59 = vld [vmem:[#allocation5 + $0x1e8] sm:$0xff]  }
  0x5c   :  { %v1790_v53 = vld [vmem:[#allocation5 + $0x198] sm:$0xff]   ;;  %v1793_v56 = vld [vmem:[#allocation5 + $0x120] sm:$0xff]   ;;  %v1797_v60 = vld [vmem:[#allocation5 + $0x128] sm:$0xff]  }
  0x5d   :  { %1606 = vmatpush3.bf16.msra.mxu0 %v1757_v18  ;;  %v1794_v57 = vld [vmem:[#allocation5 + $0x1a0] sm:$0xff]   ;;  %v1798_v61 = vld [vmem:[#allocation5 + $0x1a8] sm:$0xff]   ;;  %v1799_v62 = vld [vmem:[#allocation5 + $0x170] sm:$0xff]  }
  0x5e   :  { %1628 = vmatpush3.bf16.msra.mxu1 %v1758_v19  ;;  %1607 = vmatprep.subr.bf16.mxu0 %v1759_v20  ;;  %v1800_v63 = vld [vmem:[#allocation5 + $0x1f0] sm:$0xff]   ;;  %v1803_v2 = vld [vmem:[#allocation5 + $0x178] sm:$0xff]  }
  0x5f   :  { %1629 = vmatprep.subr.bf16.mxu1 %v1760_v21  ;;  %v1801_v0 = vld [vmem:[#allocation5 + $0x130] sm:$0xff]   ;;  %v1804_v3 = vld [vmem:[#allocation5 + $0x1f8] sm:$0xff]  }
  0x60   :  { %v1802_v1 = vld [vmem:[#allocation5 + $0x1b0] sm:$0xff]   ;;  %v1805_v4 = vld [vmem:[#allocation5 + $0x138] sm:$0xff]  }
  0x61   :  { %1608 = vmatpush3.bf16.msra.mxu0 %v1761_v22  ;;  %v1806_v5 = vld [vmem:[#allocation5 + $0x1b8] sm:$0xff]   ;;  %v83_v6 = vld [vmem:[#allocation2 + $0x10] sm:$0xff] }
  0x62   :  { %1630 = vmatpush3.bf16.msra.mxu1 %v1762_v23  ;;  %1609 = vmatprep.subr.bf16.mxu0 %v1763_v24  ;;  %v1464_v7 = vcombine.low %v83_v6, %v83_v6  ;;  %v1465_v8 = vcombine.high %v83_v6, %v83_v6  ;;  %v84_v9 = vld [vmem:[#allocation2 + $0x18] sm:$0xff]  ;;  %v1811_v12 = vld [vmem:[#allocation7] ss:$16 sps:$4 sm:$0xff]   ;;  %v1813_v13 = vld [vmem:[#allocation7 + $0x4] ss:$16 sps:$4 sm:$0xff]  }
  0x63   :  { %1631 = vmatprep.subr.bf16.mxu1 %v1764_v25  ;;  %v1466_v10 = vcombine.low %v84_v9, %v84_v9  ;;  %v1467_v11 = vcombine.high %v84_v9, %v84_v9  ;;  %v1814_v14 = vld [vmem:[#allocation7 + $0x8] ss:$16 sps:$4 sm:$0xff]   ;;  %v1816_v15 = vld [vmem:[#allocation7 + $0xc] ss:$16 sps:$4 sm:$0xff]   ;;  %v1819_v16 = vld [vmem:[#allocation7 + $0x24] ss:$16 sps:$4 sm:$0xff]  }
  0x64   :  { %v1822_v17 = vld [vmem:[#allocation7 + $0x2c] ss:$16 sps:$4 sm:$0xff]   ;;  %v1817_v18 = vld [vmem:[#allocation7 + $0x20] ss:$16 sps:$4 sm:$0xff]   ;;  %v1820_v19 = vld [vmem:[#allocation7 + $0x28] ss:$16 sps:$4 sm:$0xff]  }
  0x65   :  { %1610 = vmatpush3.bf16.msra.mxu0 %v1765_v26  ;;  %v1825_v20 = vld [vmem:[#allocation7 + $0x44] ss:$16 sps:$4 sm:$0xff]   ;;  %v1828_v21 = vld [vmem:[#allocation7 + $0x4c] ss:$16 sps:$4 sm:$0xff]   ;;  %v1823_v22 = vld [vmem:[#allocation7 + $0x40] ss:$16 sps:$4 sm:$0xff]  }
  0x66   :  { %1632 = vmatpush3.bf16.msra.mxu1 %v1766_v27  ;;  %1611 = vmatprep.subr.bf16.mxu0 %v1767_v28  ;;  %v1826_v23 = vld [vmem:[#allocation7 + $0x48] ss:$16 sps:$4 sm:$0xff]   ;;  %v1831_v24 = vld [vmem:[#allocation7 + $0x64] ss:$16 sps:$4 sm:$0xff]   ;;  %v1834_v25 = vld [vmem:[#allocation7 + $0x6c] ss:$16 sps:$4 sm:$0xff]  }
  0x67   :  { %1633 = vmatprep.subr.bf16.mxu1 %v1768_v29  ;;  %v1829_v26 = vld [vmem:[#allocation7 + $0x60] ss:$16 sps:$4 sm:$0xff]   ;;  %v1832_v27 = vld [vmem:[#allocation7 + $0x68] ss:$16 sps:$4 sm:$0xff]   ;;  %v1837_v28 = vld [vmem:[#allocation7 + $0x84] ss:$16 sps:$4 sm:$0xff]  }
  0x68   :  { %v1840_v29 = vld [vmem:[#allocation7 + $0x8c] ss:$16 sps:$4 sm:$0xff]   ;;  %v1843_v32 = vld [vmem:[#allocation7 + $0xa4] ss:$16 sps:$4 sm:$0xff]   ;;  %v1844_v35 = vld [vmem:[#allocation7 + $0xa8] ss:$16 sps:$4 sm:$0xff]  }
  0x69   :  { %1612 = vmatpush3.bf16.msra.mxu0 %v1769_v30  ;;  %v1835_v30 = vld [vmem:[#allocation7 + $0x80] ss:$16 sps:$4 sm:$0xff]   ;;  %v1846_v33 = vld [vmem:[#allocation7 + $0xac] ss:$16 sps:$4 sm:$0xff]  }
  0x6a   :  { %1634 = vmatpush3.bf16.msra.mxu1 %v1770_v31  ;;  %1641 = vmatprep.subr.bf16.mxu0 %v1775_v38  ;;  %v1838_v31 = vld [vmem:[#allocation7 + $0x88] ss:$16 sps:$4 sm:$0xff]   ;;  %v1852_v37 = vld [vmem:[#allocation7 + $0xcc] ss:$16 sps:$4 sm:$0xff]   ;;  %v1847_v38 = vld [vmem:[#allocation7 + $0xc0] ss:$16 sps:$4 sm:$0xff]  }
  0x6b   :  { %1663 = vmatprep.subr.bf16.mxu1 %v1776_v39  ;;  %v1850_v39 = vld [vmem:[#allocation7 + $0xc8] ss:$16 sps:$4 sm:$0xff]   ;;  %v1861_v9 = vld [vmem:[#allocation8] sm:$0xff]  }
  0x6c   :  { %665 = vmatmul.mubr.bf16.vlgmr.msra.gmra.mrb[0].mxu0 %v1460_v34  ;;  %v1841_v34 = vld [vmem:[#allocation7 + $0xa0] ss:$16 sps:$4 sm:$0xff]  }
  0x6d   :  { %705 = vmatmul.mubr.bf16.vlgmr.msra.gmra.mrb[0].mxu1 %v1462_v36  ;;  %1642 = vmatpush3.bf16.msra.mxu0 %v1777_v40  ;;  %v1849_v36 = vld [vmem:[#allocation7 + $0xc4] ss:$16 sps:$4 sm:$0xff]  }
  0x6e   :  { %1664 = vmatpush3.bf16.msra.mxu1 %v1778_v41  ;;  %1643 = vmatprep.subr.bf16.mxu0 %v1779_v42  ;;  %v1855_v40 = vld [vmem:[#allocation7 + $0xe4] ss:$16 sps:$4 sm:$0xff]   ;;  %v1858_v41 = vld [vmem:[#allocation7 + $0xec] ss:$16 sps:$4 sm:$0xff]   ;;  %v1853_v42 = vld [vmem:[#allocation7 + $0xe0] ss:$16 sps:$4 sm:$0xff]  }
  0x6f   :  { %1665 = vmatprep.subr.bf16.mxu1 %v1780_v43  ;;  %744 = vmatprep.mubr.bf16.mxu0 %v1465_v8  ;;  %v1856_v43 = vld [vmem:[#allocation7 + $0xe8] ss:$16 sps:$4 sm:$0xff]  }
  0x70   :  { %784 = vmatprep.mubr.bf16.mxu1 %v1467_v11 }
  0x71   :  { %1644 = vmatpush3.bf16.msra.mxu0 %v1781_v44  ;;  %v2017_v44 = vmov 0  }
  0x72   :  { %1666 = vmatpush3.bf16.msra.mxu1 %v1782_v45  ;;  %1645 = vmatprep.subr.bf16.mxu0 %v1783_v46  ;;  %v1859_v45 = vld [vmem:[#allocation8 + $0x40] sm:$0xff]  }
  0x73   :  { %1667 = vmatprep.subr.bf16.mxu1 %v1784_v47  ;;  %v1860_v46 = vld [vmem:[#allocation8 + $0xc0] sm:$0xff]  }
  0x75   :  { %1646 = vmatpush3.bf16.msra.mxu0 %v1785_v48 }
  0x76   :  { %1668 = vmatpush3.bf16.msra.mxu1 %v1786_v49  ;;  %1647 = vmatprep.subr.bf16.mxu0 %v1787_v50  ;;  %v1459_v49 = vld [vmem:[%s2136_s2] ss:$0 sm:$0xff] }
  0x77   :  { %1669 = vmatprep.subr.bf16.mxu1 %v1788_v51 }
  0x79   :  { %1648 = vmatpush3.bf16.msra.mxu0 %v1789_v52 }
  0x7a   :  { %1670 = vmatpush3.bf16.msra.mxu1 %v1790_v53  ;;  %1649 = vmatprep.subr.bf16.mxu0 %v1791_v54 }
  0x7b   :  { %1671 = vmatprep.subr.bf16.mxu1 %v1792_v55 }
  0x7d   :  { %1650 = vmatpush3.bf16.msra.mxu0 %v1793_v56 }
  0x7e   :  { %1672 = vmatpush3.bf16.msra.mxu1 %v1794_v57  ;;  %1651 = vmatprep.subr.bf16.mxu0 %v1795_v58 }
  0x7f   :  { %1673 = vmatprep.subr.bf16.mxu1 %v1796_v59 }
  0x81   :  { %1652 = vmatpush3.bf16.msra.mxu0 %v1797_v60 }
  0x82   :  { %1674 = vmatpush3.bf16.msra.mxu1 %v1798_v61  ;;  %1653 = vmatprep.subr.bf16.mxu0 %v1799_v62 }
  0x83   :  { %1675 = vmatprep.subr.bf16.mxu1 %v1800_v63 }
  0x85   :  { %1654 = vmatpush3.bf16.msra.mxu0 %v1801_v0 }
  0x86   :  { %1676 = vmatpush3.bf16.msra.mxu1 %v1802_v1  ;;  %1655 = vmatprep.subr.bf16.mxu0 %v1803_v2 }
  0x87   :  { %1677 = vmatprep.subr.bf16.mxu1 %v1804_v3 }
  0x89   :  { %1656 = vmatpush3.bf16.msra.mxu0 %v1805_v4 }
  0x8a   :  { %1678 = vmatpush3.bf16.msra.mxu1 %v1806_v5  ;;  %1008 = vmatprep.subr.bf16.mxu0 %v1813_v13  ;;  %v1864_v13 = vld [vmem:[#allocation8 + $0xc8] sm:$0xff]  }
  0x8b   :  { %1049 = vmatprep.subr.bf16.mxu1 %v1816_v15  ;;  %v1866_v15 = vld [vmem:[#allocation8 + $0x88] sm:$0xff]  }
  0x8c   :  { %745 = vmatmul.mubr.bf16.vlgmr.msra.gmra.mrb[4].mxu0 %v1464_v7 }
  0x8d   :  { %785 = vmatmul.mubr.bf16.vlgmr.msra.gmra.mrb[4].mxu1 %v1466_v10  ;;  %1009 = vmatpush1.bf16.msra.mxu0 %v1811_v12  ;;  %v1862_v10 = vld [vmem:[#allocation8 + $0x80] sm:$0xff]   ;;  %v1863_v12 = vld [vmem:[#allocation8 + $0x48] sm:$0xff]  }
  0x8e   :  { %1050 = vmatpush1.bf16.msra.mxu1 %v1814_v14  ;;  %1010 = vmatprep.subr.bf16.mxu0 %v1819_v16  ;;  %v1865_v14 = vld [vmem:[#allocation8 + $0x8] sm:$0xff]   ;;  %v1867_v16 = vld [vmem:[#allocation8 + $0x50] sm:$0xff]  }
  0x8f   :  { %1051 = vmatprep.subr.bf16.mxu1 %v1822_v17  ;;  %1040 = vmatprep.mubr.bf16.mxu0 %v2017_v44  ;;  %v1868_v17 = vld [vmem:[#allocation8 + $0xd0] sm:$0xff]  }
  0x90   :  { %1081 = vmatprep.mubr.bf16.mxu1 %v2017_v44  ;;  %v826_v44 = vld [vmem:[%s2138_s4] sm:$0xf] }
  0x91   :  { %1011 = vmatpush1.bf16.msra.mxu0 %v1817_v18  ;;  %v1869_v18 = vld [vmem:[#allocation8 + $0x10] sm:$0xff]  }
  0x92   :  { %1052 = vmatpush1.bf16.msra.mxu1 %v1820_v19  ;;  %1012 = vmatprep.subr.bf16.mxu0 %v1825_v20  ;;  %v1870_v19 = vld [vmem:[#allocation8 + $0x90] sm:$0xff]   ;;  %v1871_v20 = vld [vmem:[#allocation8 + $0x58] sm:$0xff]  }
  0x93   :  { %1053 = vmatprep.subr.bf16.mxu1 %v1828_v21  ;;  %v1872_v21 = vld [vmem:[#allocation8 + $0xd8] sm:$0xff]  }
  0x95   :  { %1013 = vmatpush1.bf16.msra.mxu0 %v1823_v22  ;;  %v1873_v22 = vld [vmem:[#allocation8 + $0x18] sm:$0xff]  }
  0x96   :  { %1054 = vmatpush1.bf16.msra.mxu1 %v1826_v23  ;;  %1014 = vmatprep.subr.bf16.mxu0 %v1831_v24  ;;  %v1874_v23 = vld [vmem:[#allocation8 + $0x98] sm:$0xff]   ;;  %v1875_v24 = vld [vmem:[#allocation8 + $0x60] sm:$0xff]  }
  0x97   :  { %1055 = vmatprep.subr.bf16.mxu1 %v1834_v25  ;;  %v1876_v25 = vld [vmem:[#allocation8 + $0xe0] sm:$0xff]  }
  0x99   :  { %1015 = vmatpush1.bf16.msra.mxu0 %v1829_v26  ;;  %v1877_v26 = vld [vmem:[#allocation8 + $0x20] sm:$0xff]  }
  0x9a   :  { %1056 = vmatpush1.bf16.msra.mxu1 %v1832_v27  ;;  %1016 = vmatprep.subr.bf16.mxu0 %v1837_v28  ;;  %v1878_v27 = vld [vmem:[#allocation8 + $0xa0] sm:$0xff]   ;;  %v1879_v28 = vld [vmem:[#allocation8 + $0x68] sm:$0xff]  }
  0x9b   :  { %1057 = vmatprep.subr.bf16.mxu1 %v1840_v29  ;;  %v1880_v29 = vld [vmem:[#allocation8 + $0xe8] sm:$0xff]  }
  0x9d   :  { %1017 = vmatpush1.bf16.msra.mxu0 %v1835_v30  ;;  %v1881_v30 = vld [vmem:[#allocation8 + $0x28] sm:$0xff]  }
  0x9e   :  { %1058 = vmatpush1.bf16.msra.mxu1 %v1838_v31  ;;  %1018 = vmatprep.subr.bf16.mxu0 %v1843_v32  ;;  %v1882_v31 = vld [vmem:[#allocation8 + $0xa8] sm:$0xff]   ;;  %v1883_v32 = vld [vmem:[#allocation8 + $0x70] sm:$0xff]  }
  0x9f   :  { %1059 = vmatprep.subr.bf16.mxu1 %v1846_v33  ;;  %v1884_v33 = vld [vmem:[#allocation8 + $0xf0] sm:$0xff]  }
  0xa1   :  { %1019 = vmatpush1.bf16.msra.mxu0 %v1841_v34  ;;  %v1885_v34 = vld [vmem:[#allocation8 + $0x30] sm:$0xff]  }
  0xa2   :  { %1060 = vmatpush1.bf16.msra.mxu1 %v1844_v35  ;;  %1020 = vmatprep.subr.bf16.mxu0 %v1849_v36  ;;  %v1886_v35 = vld [vmem:[#allocation8 + $0xb0] sm:$0xff]   ;;  %v1887_v36 = vld [vmem:[#allocation8 + $0x78] sm:$0xff]  }
  0xa3   :  { %1061 = vmatprep.subr.bf16.mxu1 %v1852_v37  ;;  %v1888_v37 = vld [vmem:[#allocation8 + $0xf8] sm:$0xff]  }
  0xa5   :  { %1021 = vmatpush1.bf16.msra.mxu0 %v1847_v38  ;;  %v1889_v38 = vld [vmem:[#allocation8 + $0x38] sm:$0xff]  }
  0xa6   :  { %1062 = vmatpush1.bf16.msra.mxu1 %v1850_v39  ;;  %1022 = vmatprep.subr.bf16.mxu0 %v1855_v40  ;;  %v1890_v39 = vld [vmem:[#allocation8 + $0xb8] sm:$0xff]   ;;  %v828_v40 = vlaneseq }
  0xa7   :  { %1063 = vmatprep.subr.bf16.mxu1 %v1858_v41 }
  0xa8   :  { %v829_v41 = vshrl.u32 %v828_v40, 7 }
  0xa9   :  { %1023 = vmatpush1.bf16.msra.mxu0 %v1853_v42 }
  0xaa   :  { %1064 = vmatpush1.bf16.msra.mxu1 %v1856_v43  ;;  %1685 = vmatprep.subr.bf16.mxu0 %v1859_v45  ;;  %v830_v42 = vsub.s32 0, %v829_v41  ;;  %v838_v43 = vsub.s32 2, %v829_v41  ;;  %v834_v45 = vsub.s32 1, %v829_v41 }
  0xab   :  { %1707 = vmatprep.subr.bf16.mxu1 %v1860_v46  ;;  %v842_v46 = vsub.s32 3, %v829_v41 }
 0x13f   :  { %v1613_v47 = vpop.f32.mrb[0].mxu0 }
 0x140   :  { %v1635_v48 = vpop.f32.mrb[0].mxu1  ;;  %v1614_v50 = vpop.f32.mrb[1].mxu0 }
 0x141   :  { %v1636_v51 = vpop.f32.mrb[1].mxu1  ;;  %v1615_v52 = vadd.f32 %v1614_v50, %v1613_v47  ;;  %v1616_v54 = vpop.f32.mrb[2].mxu0  ;;  %v831_v47 = vrot.slane %v826_v44, %v830_v42  ;;  %v843_v50 = vrot.slane %v826_v44, %v842_v46 }
 0x142   :  { %v1637_v53 = vadd.f32 %v1636_v51, %v1635_v48  ;;  %v1638_v55 = vpop.f32.mrb[2].mxu1  ;;  %v1617_v56 = vpop.f32.mrb[3].mxu0  ;;  %v839_v48 = vrot.slane %v826_v44, %v838_v43 }
 0x143   :  { %v1639_v57 = vpop.f32.mrb[3].mxu1  ;;  %v667_v58 = vadd.f32 %v1615_v52, %v1459_v49  ;;  %v835_v49 = vrot.slane %v826_v44, %v834_v45 }
 0x145   :  { %v707_v59 = vadd.f32 %v1637_v53, %v667_v58 }
 0x15f   :  { %v1657_v60 = vpop.f32.mrb[4].mxu0 }
 0x160   :  { %v1679_v61 = vpop.f32.mrb[4].mxu1  ;;  %v1658_v62 = vpop.f32.mrb[5].mxu0 }
 0x161   :  { %v1680_v63 = vpop.f32.mrb[5].mxu1  ;;  %v1659_v0 = vadd.f32 %v1658_v62, %v1657_v60  ;;  %v1660_v2 = vpop.f32.mrb[6].mxu0 }
 0x162   :  { %v1681_v1 = vadd.f32 %v1680_v63, %v1679_v61  ;;  %v1682_v3 = vpop.f32.mrb[6].mxu1  ;;  %v1661_v4 = vpop.f32.mrb[7].mxu0 }
 0x163   :  { %v1683_v5 = vpop.f32.mrb[7].mxu1  ;;  %v747_v6 = vadd.f32 %v1659_v0, %v707_v59 }
 0x165   :  { %v787_v7 = vadd.f32 %v1681_v1, %v747_v6 }
 0x167   :  { %v792_v8 = vmax.f32 %v787_v7, 0.0 }
 0x169   :  { %v793_v11 = vpack.c.bf16 %v792_v8, %v792_v8 }
 0x16b   :  { %1041 = vmatmul.mubr.bf16.vlgmr.msra.gmra.mrb[8].mxu0 %v793_v11  ;;  %1082 = vmatmul.mubr.bf16.vlgmr.msra.gmra.mrb[8].mxu1 %v793_v11 }
 0x16c   :  { %1686 = vmatpush3.bf16.msra.mxu0 %v1861_v9  ;;  %1708 = vmatpush3.bf16.msra.mxu1 %v1862_v10  ;;  %v1564_v9 = vld [vmem:[%s2140_s6] ss:$0 sm:$0xff] }
 0x16d   :  { %1687 = vmatprep.subr.bf16.mxu0 %v1863_v12  ;;  %1709 = vmatprep.subr.bf16.mxu1 %v1864_v13 }
 0x170   :  { %1688 = vmatpush3.bf16.msra.mxu0 %v1865_v14  ;;  %1710 = vmatpush3.bf16.msra.mxu1 %v1866_v15 }
 0x171   :  { %1689 = vmatprep.subr.bf16.mxu0 %v1867_v16  ;;  %1711 = vmatprep.subr.bf16.mxu1 %v1868_v17 }
 0x174   :  { %1690 = vmatpush3.bf16.msra.mxu0 %v1869_v18  ;;  %1712 = vmatpush3.bf16.msra.mxu1 %v1870_v19 }
 0x175   :  { %1691 = vmatprep.subr.bf16.mxu0 %v1871_v20  ;;  %1713 = vmatprep.subr.bf16.mxu1 %v1872_v21 }
 0x178   :  { %1692 = vmatpush3.bf16.msra.mxu0 %v1873_v22  ;;  %1714 = vmatpush3.bf16.msra.mxu1 %v1874_v23 }
 0x179   :  { %1693 = vmatprep.subr.bf16.mxu0 %v1875_v24  ;;  %1715 = vmatprep.subr.bf16.mxu1 %v1876_v25 }
 0x17c   :  { %1694 = vmatpush3.bf16.msra.mxu0 %v1877_v26  ;;  %1716 = vmatpush3.bf16.msra.mxu1 %v1878_v27 }
 0x17d   :  { %1695 = vmatprep.subr.bf16.mxu0 %v1879_v28  ;;  %1717 = vmatprep.subr.bf16.mxu1 %v1880_v29 }
 0x180   :  { %1696 = vmatpush3.bf16.msra.mxu0 %v1881_v30  ;;  %1718 = vmatpush3.bf16.msra.mxu1 %v1882_v31 }
 0x181   :  { %1697 = vmatprep.subr.bf16.mxu0 %v1883_v32  ;;  %1719 = vmatprep.subr.bf16.mxu1 %v1884_v33 }
 0x184   :  { %1698 = vmatpush3.bf16.msra.mxu0 %v1885_v34  ;;  %1720 = vmatpush3.bf16.msra.mxu1 %v1886_v35 }
 0x185   :  { %1699 = vmatprep.subr.bf16.mxu0 %v1887_v36  ;;  %1721 = vmatprep.subr.bf16.mxu1 %v1888_v37 }
 0x188   :  { %1700 = vmatpush3.bf16.msra.mxu0 %v1889_v38  ;;  %1722 = vmatpush3.bf16.msra.mxu1 %v1890_v39 }
 0x23e   :  { %v1042_v51 = vpop.f32.mrb[8].mxu0  ;;  %v1083_v52 = vpop.f32.mrb[8].mxu1 }
 0x23f   :  { %v1043_v53 = vadd.f32 %v1042_v51, %v831_v47  ;;  %v1084_v54 = vadd.f32 %v1083_v52, %v839_v48  ;;  %v1044_v55 = vpop.f32.mrb[9].mxu0  ;;  %v1085_v56 = vpop.f32.mrb[9].mxu1 }
 0x240   :  { %v1045_v57 = vadd.f32 %v1044_v55, %v835_v49  ;;  %v1086_v58 = vadd.f32 %v1085_v56, %v843_v50  ;;  %v1046_v59 = vpop.f32.mrb[10].mxu0  ;;  %v1087_v60 = vpop.f32.mrb[10].mxu1 }
 0x241   :  { %v1090_v61 = vmax.f32 %v1043_v53, 0.0  ;;  %v1092_v62 = vmax.f32 %v1084_v54, 0.0  ;;  %v1047_v63 = vpop.f32.mrb[11].mxu0  ;;  %v1088_v0 = vpop.f32.mrb[11].mxu1 }
 0x242   :  { %v1091_v1 = vmax.f32 %v1045_v57, 0.0  ;;  %v1093_v2 = vmax.f32 %v1086_v58, 0.0 }
 0x243   :  { %v1094_v5 = vpack.c.bf16 %v1090_v61, %v1090_v61  ;;  %v1096_v6 = vpack.c.bf16 %v1092_v62, %v1092_v62 }
 0x244   :  { %v1095_v3 = vpack.c.bf16 %v1091_v1, %v1091_v1  ;;  %v1097_v4 = vpack.c.bf16 %v1093_v2, %v1093_v2 }
 0x246   :  { %1393 = vmatprep.mubr.bf16.mxu0 %v1095_v3  ;;  %1433 = vmatprep.mubr.bf16.mxu1 %v1097_v4 }
 0x247   :  { %1394 = vmatmul.mubr.bf16.vlgmr.msra.gmra.mrb[12].mxu0 %v1094_v5  ;;  %1434 = vmatmul.mubr.bf16.vlgmr.msra.gmra.mrb[12].mxu1 %v1096_v6 }
 0x31a   :  { %v1701_v7 = vpop.f32.mrb[12].mxu0  ;;  %v1723_v8 = vpop.f32.mrb[12].mxu1 }
 0x31b   :  { %v1702_v10 = vpop.f32.mrb[13].mxu0  ;;  %v1724_v11 = vpop.f32.mrb[13].mxu1 }
 0x31c   :  { %v1703_v12 = vadd.f32 %v1702_v10, %v1701_v7  ;;  %v1725_v13 = vadd.f32 %v1724_v11, %v1723_v8  ;;  %v1704_v14 = vpop.f32.mrb[14].mxu0  ;;  %v1726_v15 = vpop.f32.mrb[14].mxu1 }
 0x31d   :  { %v1705_v16 = vpop.f32.mrb[15].mxu0  ;;  %v1727_v17 = vpop.f32.mrb[15].mxu1 }
 0x31e   :  { %v1396_v18 = vadd.f32 %v1703_v12, %v1564_v9 }
 0x320   :  { %v1436_v19 = vadd.f32 %v1725_v13, %v1396_v18 }
 0x322   :  { %1441 = vst [vmem:[#allocation10] sm:$0xff] %v1436_v19 }
 0x323   :  { %1990 = shalt.err (!%p1987_p8)
}
 0x324   :  { %s1991_s10 = scalar_lea.hbm %s2141_s7, 128 }
 0x325   :  { %p1992_p9 = scmp.ne.s32.totalorder %s2141_s7, %s1991_s10  ;;  %p1995_p10 = scmp.lt.u32.totalorder %s1991_s10, %s2141_s7 }
 0x327   :  { %p1997_p11 = pnand %p1995_p10, %p1992_p9 }
 0x329   :  { %2000 = shalt.err (!%p1997_p11)
}
 0x32a   :  { %1451 = dma.vmem_to_hbm [thread:$0]  %s1449_s30, 128, %s2141_s7, [#allocation4]  }
 0x32b   :  { %2007 = dma.done.wait [#allocation4], 128  }
 0x32c   :  { %2008 = vsyncadd [#allocation4], 4294967168 }
 0x32d   :  { %1455 = vsyncpa [#allocation3], 1 }
 0x32e   :  { %1456 = vsyncpa [#allocation6], 1 }
 0x32f   :  { %1457 = vsyncpa [#allocation9], 1 }
 0x330   :  { %1458 = vsyncpa [#allocation4], 1 }

</bundles_post_ra>
